<compile_context>
chip_gen: v7x
topology: tpu7x:2x2x1
jax: 0.10.0
libtpu: 0.0.40
codegen_flags: <defaults>
</compile_context>

<pallas_src>
import jax
import jax.numpy as jnp
from jax.experimental import pallas as pl
from jax.experimental.pallas import tpu as pltpu


def attention_kernel(x_ref, w_ref, b_ref, o_ref):
    # x_ref: (1, C, HW)  one batch element; channels on sublanes, spatial on lanes
    # w_ref: (C, C)      1x1 conv weight, W[c_out, c_in]
    # b_ref: (C, 1)      conv bias
    # o_ref: (1, C, HW)  gated output, same layout as input
    x = x_ref[0]                                                    # (C, HW)
    att = jnp.dot(w_ref[...], x, preferred_element_type=jnp.float32)
    att = att + b_ref[...]              # (C, 1) broadcast along the lane axis
    att = jax.nn.sigmoid(att)           # EUP
    o_ref[0] = (x * att).astype(o_ref.dtype)


def attention_forward(x_nchw, weight_oihw, bias):
    """Mirrors AttentionBlock.forward: x * sigmoid(conv1x1(x)); NCHW in/out."""
    B, C, H, W = x_nchw.shape
    HW = H * W
    x2 = x_nchw.reshape(B, C, HW)        # free reshape: NCHW stays contiguous
    w2 = weight_oihw.reshape(C, C)       # (C_out, C_in, 1, 1) -> (C_out, C_in)
    b2 = bias.reshape(C, 1)

    out = pl.pallas_call(
        attention_kernel,
        out_shape=jax.ShapeDtypeStruct((B, C, HW), x_nchw.dtype),
        grid=(B,),
        in_specs=[
            pl.BlockSpec((1, C, HW), lambda b: (b, 0, 0)),
            pl.BlockSpec((C, C), lambda b: (0, 0)),
            pl.BlockSpec((C, 1), lambda b: (0, 0)),
        ],
        out_specs=pl.BlockSpec((1, C, HW), lambda b: (b, 0, 0)),
        compiler_params=pltpu.CompilerParams(
            dimension_semantics=("parallel",)),
    )(x2, w2, b2)
    return out.reshape(B, C, H, W)


def reference_forward(x_nchw, weight_oihw, bias):
    C = weight_oihw.shape[0]
    w2 = weight_oihw.reshape(C, C)
    att = jnp.einsum("oi,bihw->bohw", w2, x_nchw) + bias[None, :, None, None]
    return x_nchw * jax.nn.sigmoid(att)


if __name__ == "__main__":
    B, C, H, W = 2, 4, 16, 16

    key = jax.random.PRNGKey(0)
    kx, kw, kb = jax.random.split(key, 3)
    x = jax.random.normal(kx, (B, C, H, W), dtype=jnp.float32)
    # Shapes match nn.Conv2d(C, C, kernel_size=1): weight (C, C, 1, 1), bias (C,)
    weight = jax.random.normal(kw, (C, C, 1, 1), dtype=jnp.float32) / jnp.sqrt(C)
    bias = jax.random.normal(kb, (C,), dtype=jnp.float32) * 0.1

    out = jax.jit(attention_forward)(x, weight, bias)
    out = jax.block_until_ready(out)

    ref = reference_forward(x, weight, bias)
    assert out.shape == (B, C, H, W)
    assert jnp.allclose(out, ref, atol=1e-4, rtol=1e-4)

    print("KERNEL_OK")
</pallas_src>

<mosaic_0001>
module attributes {stable_mosaic.version = 11 : i64} {
  func.func @attention_kernel(%arg0: i32, %arg1: memref<1x4x256xf32, #tpu.memory_space<vmem>>, %arg2: memref<4x4xf32, #tpu.memory_space<vmem>>, %arg3: memref<4x1xf32, #tpu.memory_space<vmem>>, %arg4: memref<1x4x256xf32, #tpu.memory_space<vmem>>) attributes {dimension_semantics = [#tpu.dimension_semantics<parallel>], iteration_bounds = array<i64: 2>, scalar_prefetch = 0 : i64, scratch_operands = 0 : i64, tpu.core_type = #tpu.core_type<tc>, window_params = [{transform_indices = @transform_0, window_bounds = array<i64: 1, 4, 256>}, {pipeline_mode = #tpu.pipeline_mode<synchronous>, transform_indices = @transform_1, window_bounds = array<i64: 4, 4>}, {pipeline_mode = #tpu.pipeline_mode<synchronous>, transform_indices = @transform_2, window_bounds = array<i64: 4, 1>}, {transform_indices = @transform_3, window_bounds = array<i64: 1, 4, 256>}]} {
    %c0 = arith.constant 0 : index
    %c0_0 = arith.constant 0 : index
    %c0_1 = arith.constant 0 : index
    %0 = vector.load %arg1[%c0, %c0_0, %c0_1] : memref<1x4x256xf32, #tpu.memory_space<vmem>>, vector<1x4x256xf32>
    %1 = vector.shape_cast %0 : vector<1x4x256xf32> to vector<4x256xf32>
    %c0_2 = arith.constant 0 : index
    %c0_3 = arith.constant 0 : index
    %2 = vector.load %arg2[%c0_2, %c0_3] : memref<4x4xf32, #tpu.memory_space<vmem>>, vector<4x4xf32>
    %cst = arith.constant dense<0.000000e+00> : vector<4x256xf32>
    %3 = tpu.matmul %2, %1, %cst {dimension_numbers = #tpu.dot_dimension_numbers<[1], [0], [0], [1], [0, 0, 1, 1], [], []>} : vector<4x4xf32>, vector<4x256xf32>, vector<4x256xf32> -> vector<4x256xf32>
    %c0_4 = arith.constant 0 : index
    %c0_5 = arith.constant 0 : index
    %4 = vector.load %arg3[%c0_4, %c0_5] : memref<4x1xf32, #tpu.memory_space<vmem>>, vector<4x1xf32>
    %5 = vector.broadcast %4 : vector<4x1xf32> to vector<4x256xf32>
    %6 = arith.addf %3, %5 : vector<4x256xf32>
    %7 = arith.negf %6 : vector<4x256xf32>
    %8 = math.exp %7 : vector<4x256xf32>
    %cst_6 = arith.constant 1.000000e+00 : f32
    %9 = vector.broadcast %cst_6 : f32 to vector<4x256xf32>
    %10 = arith.addf %9, %8 : vector<4x256xf32>
    %11 = arith.divf %9, %10 : vector<4x256xf32>
    %12 = arith.mulf %1, %11 : vector<4x256xf32>
    %c0_7 = arith.constant 0 : index
    %c0_8 = arith.constant 0 : index
    %c0_9 = arith.constant 0 : index
    %13 = vector.load %arg4[%c0_7, %c0_8, %c0_9] : memref<1x4x256xf32, #tpu.memory_space<vmem>>, vector<1x4x256xf32>
    %14 = vector.shape_cast %13 : vector<1x4x256xf32> to vector<4x256xf32>
    %15 = vector.shape_cast %12 : vector<4x256xf32> to vector<1x4x256xf32>
    tpu.vector_store %arg4[%c0_7, %c0_8, %c0_9], %15 {strides = array<i32>} : memref<1x4x256xf32, #tpu.memory_space<vmem>>, vector<1x4x256xf32>,
    return
  }
  func.func @transform_0(%arg0: i32) -> (i32, i32, i32) {
    %c0_i32 = arith.constant 0 : i32
    %c0_i32_0 = arith.constant 0 : i32
    %c0_i32_1 = arith.constant 0 : i32
    return %arg0, %c0_i32, %c0_i32_0 : i32, i32, i32
  }
  func.func @transform_1(%arg0: i32) -> (i32, i32) {
    %c0_i32 = arith.constant 0 : i32
    %c0_i32_0 = arith.constant 0 : i32
    %c0_i32_1 = arith.constant 0 : i32
    return %c0_i32, %c0_i32_0 : i32, i32
  }
  func.func @transform_2(%arg0: i32) -> (i32, i32) {
    %c0_i32 = arith.constant 0 : i32
    %c0_i32_0 = arith.constant 0 : i32
    %c0_i32_1 = arith.constant 0 : i32
    return %c0_i32, %c0_i32_0 : i32, i32
  }
  func.func @transform_3(%arg0: i32) -> (i32, i32, i32) {
    %c0_i32 = arith.constant 0 : i32
    %c0_i32_0 = arith.constant 0 : i32
    %c0_i32_1 = arith.constant 0 : i32
    return %arg0, %c0_i32, %c0_i32_0 : i32, i32, i32
  }
}

</mosaic_0001>

<bundles_post_ra>
// kernel: attention_forward.1
= control target key start
LH: loop header
LB: loop body
LE: loop exit
PB: predicated region body
PF: predicated region fallthrough
CT: control target
= control target key end

     0   :  { %s402_s12 = smov 0   ;;  %s428_s0 = inlined_call_operand.vmem [shape: f32[2,4,256], index: 0, kind: input, shape index: {}]   ;;  %s429_s1 = inlined_call_operand.vmem [shape: f32[4,4], index: 1, kind: input, shape index: {}]   ;;  %s430_s2 = inlined_call_operand.vmem [shape: f32[4,1], index: 2, kind: input, shape index: {}]   ;;  %s431_s3 = inlined_call_operand.vmem [shape: f32[2,4,256], index: 3, kind: output, shape index: {}]  }
   0x1 LB: > { %s334_s13 = sadd.s32 4294967295, %s378_s12   ;;  %p338_p0 = scmp.ge.s32.totalorder %s378_s12, 1  ;;  %s378_s12 = sphi %s402_s12, %s13_s12  }
   0x2   : > { %p137_p1 = scmp.lt.s32.totalorder %s378_s12, 3 }
   0x4   : > { %p138_p2 = pnand %p338_p0, %p137_p1 }
   0x5   : > { %p161_p3 = scmp.lt.s32.totalorder (!%p138_p2), %s334_s13, 1  ;;  %v380_v0 = vmov (!%p138_p2), 0.0   ;;  %v173_v1 = vld [vmem:[%s430_s2] sm:$0xf] (!%p138_p2)  ;;  %v381_v2 = vmov (!%p138_p2), 0   ;;  %vm185_vm0 = vcmask (!%p138_p2), 1043456  }
   0x6   : > { %141 = sbr.rel (%p138_p2) target bundleno = 267 (0x10b), region = 32  ;;  %254 = vmatprep.mubr.f32.mxu0 (!%p138_p2), %v380_v0  ;;  %362 = vset.pattern.permute.xlu0 (!%p138_p2), %v381_v2  ;;  %v172_v5 = vld [vmem:[%s429_s1] sm:$0xf] (!%p138_p2)  ;;  %vm181_vm1 = vcmask (!%p138_p2), 31744  }
   0x7   : > { %176 = vperm.xlu0 (!%p138_p2), %362, %v173_v1  }
   0xd   : > { %s433_s13 = smov (!%p161_p3, %s334_s13), 1 }
   0xe   : > { %s350_s16 = sshll.u32 %s433_s13, 3 }
   0xf   : > { %s165_s19 = scalar_lea.vmem %s428_s0, %s350_s16  ;;  %s170_s24 = scalar_lea.vmem %s431_s3, %s350_s16 }
  0x10   : > { %v171_v3 = vld [vmem:[%s165_s19] sm:$0xff] }
  0x11   : > { %v180_v4 = vcombine.high %v171_v3, %v171_v3 }
  0x13   : > { %343 = vmatprep.subr.msk.mxu0 %vm185_vm0, %v180_v4 }
  0x14   : > { %344 = vmatpush1.msk.msra.mxu0 %vm185_vm0, %v171_v3 }
  0x15   : > { %345 = vmatmul.mubr.msk.f32.vlgmr.msra.gmra.mrb[0].mxu0 %vm181_vm1, %v172_v5 }
  0x86   : > { %v177_v6 = vpop.permute.xlu0 %176 }
  0xe8   : > { %v256_v7 = vpop.f32.mrb[0].mxu0 }
  0xe9   : > { %v257_v8 = vadd.f32 %v256_v7, %v177_v6  ;;  %v258_v9 = vpop.f32.mrb[1].mxu0 }
  0xea   : > { %v259_v10 = vadd.f32 %v258_v9, %v177_v6 }
  0xeb   : > { %v346_v11 = vmul.f32 -1.442695, %v257_v8 }
  0xec   : > { %v347_v12 = vmul.f32 -1.442695, %v259_v10 }
  0xed   : > { %364 = vpow2.f32 %v346_v11 }
  0xee   : > { %366 = vpow2.f32 %v347_v12 }
  0xf7   : > { %v365_v13 = vpop.eup %364 }
  0xf8   : > { %v367_v14 = vpop.eup %366  ;;  %v267_v15 = vadd.f32 1.0, %v365_v13 }
  0xf9   : > { %v268_v16 = vadd.f32 1.0, %v367_v14 }
  0xfa   : > { %368 = vrcp.f32 %v267_v15 }
  0xfb   : > { %370 = vrcp.f32 %v268_v16 }
 0x104   : > { %v369_v17 = vpop.eup %368 }
 0x105   : > { %v371_v18 = vpop.eup %370 }
 0x106   : > { %v275_v19 = vcombine.low %v369_v17, %v371_v18 }
 0x108   : > { %v277_v20 = vmul.f32 %v275_v19, %v171_v3 }
 0x10a   : > { %278 = vst [vmem:[%s170_s24] sm:$0xff] %v277_v20 }
 0x10b PF: > { %s13_s12 = sadd.s32 1, %s378_s12  }
 0x10c   : > { %p10_p4 = scmp.ge.s32.totalorder %s13_s12, 4  }
 0x10e   :  { %12 = sbr.rel (!%p10_p4) target bundleno = 1 (0x1), region = 62 }

</bundles_post_ra>
